<compile_context>
chip_gen: v6e
topology: v6e:2x2x1
jax: 0.10.0
libtpu: 0.0.40
codegen_flags: <defaults>
</compile_context>

<pallas_src>
import functools
import math

import jax
import jax.numpy as jnp
from jax.experimental import pallas as pl
from jax.experimental.pallas import tpu as pltpu


def _round_up(x, m):
    return ((x + m - 1) // m) * m


def _choose_batch_tile(batch):
    """Pick a batch tile: small batches -> one sublane-aligned block,
    large batches -> 512 rows (256-aligned for v6e/v7x MXU, VMEM-safe on v7x/v5e)."""
    if batch <= 256:
        return max(8, _round_up(batch, 8))
    return 512


def _make_mlp_kernel(n_layers):
    """Build a fused MLP kernel body for a fixed number of linear layers."""

    def kernel(*refs):
        obs_ref = refs[0]
        param_refs = refs[1 : 1 + 2 * n_layers]
        out_ref = refs[1 + 2 * n_layers]

        x = obs_ref[...]  # bf16 (TB, obs_dim)
        for j in range(n_layers):
            w = param_refs[2 * j][...]       # bf16 (in_j, out_j)
            b = param_refs[2 * j + 1][...]   # f32  (1, out_j) -> broadcasts over batch
            h = jnp.dot(x, w, preferred_element_type=jnp.float32) + b
            if j < n_layers - 1:             # ReLU on hidden layers only (in f32)
                x = jnp.maximum(h, 0.0).astype(jnp.bfloat16)
            else:
                x = h
        out_ref[...] = x.astype(out_ref.dtype)

    return kernel


@jax.jit
def mlp_q_forward(obs, weights, biases):
    """Run the fused MLP Q-function forward pass in a single Pallas kernel.

    obs:     (B, obs_dim) float32
    weights: list of (in_j, out_j) float32 arrays (already transposed vs torch)
    biases:  list of (1, out_j) float32 arrays
    returns: (B, act_dim) float32
    """
    n_layers = len(weights)
    B, obs_dim = obs.shape
    act_dim = weights[-1].shape[1]

    # bf16 matmul operands, f32 accumulation / bias / activation.
    obs_bf16 = obs.astype(jnp.bfloat16)
    weights_bf16 = [w.astype(jnp.bfloat16) for w in weights]

    # Batch tiling.
    tb = _choose_batch_tile(B)
    padded_b = _round_up(B, tb)
    if padded_b != B:
        obs_bf16 = jnp.pad(obs_bf16, ((0, padded_b - B), (0, 0)))
    grid = (padded_b // tb,)

    kernel = _make_mlp_kernel(n_layers)

    # obs / out blocks march along the batch axis; weights & biases are
    # grid-invariant full blocks (Pallas elides the re-DMA when the block
    # index does not change), so they stay resident in VMEM.
    in_specs = [pl.BlockSpec((tb, obs_dim), lambda i: (i, 0))]
    operands = [obs_bf16]
    for w, b in zip(weights_bf16, biases):
        operands += [w, b]
        in_specs += [
            pl.BlockSpec(w.shape, lambda i: (0, 0)),
            pl.BlockSpec(b.shape, lambda i: (0, 0)),
        ]
    out_spec = pl.BlockSpec((tb, act_dim), lambda i: (i, 0))

    # Advisory cost so XLA can overlap this small call with neighbouring ops.
    flops = 2 * padded_b * sum(int(w.shape[0]) * int(w.shape[1]) for w in weights)
    bytes_accessed = (
        obs_bf16.size * obs_bf16.dtype.itemsize
        + sum(w.size * w.dtype.itemsize for w in weights_bf16)
        + sum(b.size * b.dtype.itemsize for b in biases)
        + padded_b * act_dim * 4
    )
    cost = pl.CostEstimate(flops=flops, transcendentals=0, bytes_accessed=bytes_accessed)

    out = pl.pallas_call(
        kernel,
        out_shape=jax.ShapeDtypeStruct((padded_b, act_dim), jnp.float32),
        grid_spec=pl.GridSpec(grid=grid, in_specs=in_specs, out_specs=out_spec),
        compiler_params=pltpu.CompilerParams(
            dimension_semantics=("parallel",),  # shards batch tiles across TCs on v7x
        ),
        cost_estimate=cost,
    )(*operands)

    if padded_b != B:
        out = out[:B]
    return out


def init_mlp_params(key, sizes):
    """Deterministic PyTorch-Linear-style init: U(-1/sqrt(fan_in), 1/sqrt(fan_in)).

    Returns weights already transposed to (in_dim, out_dim) and biases as (1, out_dim).
    """
    weights, biases = [], []
    for j in range(len(sizes) - 1):
        fan_in, fan_out = sizes[j], sizes[j + 1]
        k = 1.0 / math.sqrt(fan_in)
        key, kw, kb = jax.random.split(key, 3)
        w = jax.random.uniform(kw, (fan_in, fan_out), jnp.float32, -k, k)
        b = jax.random.uniform(kb, (1, fan_out), jnp.float32, -k, k)
        weights.append(w)
        biases.append(b)
    return weights, biases


def reference_forward(obs, weights, biases):
    """Pure-JAX f32 reference mirroring nn.Sequential(Linear, ReLU, ..., Linear, Identity)."""
    x = obs
    n = len(weights)
    for j, (w, b) in enumerate(zip(weights, biases)):
        x = x @ w + b
        if j < n - 1:
            x = jnp.maximum(x, 0.0)
    return x


if __name__ == "__main__":
    # Small shapes consistent with MLPQFunction(obs_dim, act_dim, hidden_sizes, ReLU)
    obs_dim = 16
    act_dim = 8
    hidden_sizes = (32, 32)
    batch = 8

    sizes = [obs_dim] + list(hidden_sizes) + [act_dim]

    key = jax.random.PRNGKey(0)
    key, k_obs = jax.random.split(key)
    obs = jax.random.normal(k_obs, (batch, obs_dim), jnp.float32)

    weights, biases = init_mlp_params(key, sizes)

    q = mlp_q_forward(obs, weights, biases)
    q = jax.block_until_ready(q)

    # f32 reference; tolerance loosened because the kernel feeds the MXU bf16
    # operands (with f32 accumulation).
    q_ref = reference_forward(obs, weights, biases)
    assert q.shape == (batch, act_dim)
    assert jnp.allclose(q, q_ref, atol=3e-2, rtol=3e-2), "Pallas output mismatch vs reference"

    print("KERNEL_OK")
</pallas_src>

<mosaic_0001>
module attributes {stable_mosaic.version = 11 : i64} {
  func.func @kernel(%arg0: i32, %arg1: memref<8x16xbf16, #tpu.memory_space<vmem>>, %arg2: memref<16x32xbf16, #tpu.memory_space<vmem>>, %arg3: memref<1x32xf32, #tpu.memory_space<vmem>>, %arg4: memref<32x32xbf16, #tpu.memory_space<vmem>>, %arg5: memref<1x32xf32, #tpu.memory_space<vmem>>, %arg6: memref<32x8xbf16, #tpu.memory_space<vmem>>, %arg7: memref<1x8xf32, #tpu.memory_space<vmem>>, %arg8: memref<8x8xf32, #tpu.memory_space<vmem>>) attributes {dimension_semantics = [#tpu.dimension_semantics<parallel>], iteration_bounds = array<i64: 1>, scalar_prefetch = 0 : i64, scratch_operands = 0 : i64, tpu.core_type = #tpu.core_type<tc>, window_params = [{transform_indices = @transform_0, window_bounds = array<i64: 8, 16>}, {pipeline_mode = #tpu.pipeline_mode<synchronous>, transform_indices = @transform_1, window_bounds = array<i64: 16, 32>}, {pipeline_mode = #tpu.pipeline_mode<synchronous>, transform_indices = @transform_2, window_bounds = array<i64: 1, 32>}, {pipeline_mode = #tpu.pipeline_mode<synchronous>, transform_indices = @transform_3, window_bounds = array<i64: 32, 32>}, {pipeline_mode = #tpu.pipeline_mode<synchronous>, transform_indices = @transform_4, window_bounds = array<i64: 1, 32>}, {pipeline_mode = #tpu.pipeline_mode<synchronous>, transform_indices = @transform_5, window_bounds = array<i64: 32, 8>}, {pipeline_mode = #tpu.pipeline_mode<synchronous>, transform_indices = @transform_6, window_bounds = array<i64: 1, 8>}, {transform_indices = @transform_7, window_bounds = array<i64: 8, 8>}]} {
    %c0 = arith.constant 0 : index
    %c0_0 = arith.constant 0 : index
    %0 = vector.load %arg1[%c0, %c0_0] : memref<8x16xbf16, #tpu.memory_space<vmem>>, vector<8x16xbf16>
    %c0_1 = arith.constant 0 : index
    %c0_2 = arith.constant 0 : index
    %1 = vector.load %arg2[%c0_1, %c0_2] : memref<16x32xbf16, #tpu.memory_space<vmem>>, vector<16x32xbf16>
    %c0_3 = arith.constant 0 : index
    %c0_4 = arith.constant 0 : index
    %2 = vector.load %arg3[%c0_3, %c0_4] : memref<1x32xf32, #tpu.memory_space<vmem>>, vector<1x32xf32>
    %cst = arith.constant dense<0.000000e+00> : vector<8x32xf32>
    %3 = tpu.matmul %0, %1, %cst {dimension_numbers = #tpu.dot_dimension_numbers<[1], [0], [0], [1], [0, 0, 1, 1], [], []>} : vector<8x16xbf16>, vector<16x32xbf16>, vector<8x32xf32> -> vector<8x32xf32>
    %4 = vector.broadcast %2 : vector<1x32xf32> to vector<8x32xf32>
    %5 = arith.addf %3, %4 : vector<8x32xf32>
    %cst_5 = arith.constant 0.000000e+00 : f32
    %6 = vector.broadcast %cst_5 : f32 to vector<8x32xf32>
    %7 = arith.maximumf %5, %6 : vector<8x32xf32>
    %8 = arith.truncf %7 : vector<8x32xf32> to vector<8x32xbf16>
    %c0_6 = arith.constant 0 : index
    %c0_7 = arith.constant 0 : index
    %9 = vector.load %arg4[%c0_6, %c0_7] : memref<32x32xbf16, #tpu.memory_space<vmem>>, vector<32x32xbf16>
    %c0_8 = arith.constant 0 : index
    %c0_9 = arith.constant 0 : index
    %10 = vector.load %arg5[%c0_8, %c0_9] : memref<1x32xf32, #tpu.memory_space<vmem>>, vector<1x32xf32>
    %cst_10 = arith.constant dense<0.000000e+00> : vector<8x32xf32>
    %11 = tpu.matmul %8, %9, %cst_10 {dimension_numbers = #tpu.dot_dimension_numbers<[1], [0], [0], [1], [0, 0, 1, 1], [], []>} : vector<8x32xbf16>, vector<32x32xbf16>, vector<8x32xf32> -> vector<8x32xf32>
    %12 = vector.broadcast %10 : vector<1x32xf32> to vector<8x32xf32>
    %13 = arith.addf %11, %12 : vector<8x32xf32>
    %cst_11 = arith.constant 0.000000e+00 : f32
    %14 = vector.broadcast %cst_11 : f32 to vector<8x32xf32>
    %15 = arith.maximumf %13, %14 : vector<8x32xf32>
    %16 = arith.truncf %15 : vector<8x32xf32> to vector<8x32xbf16>
    %c0_12 = arith.constant 0 : index
    %c0_13 = arith.constant 0 : index
    %17 = vector.load %arg6[%c0_12, %c0_13] : memref<32x8xbf16, #tpu.memory_space<vmem>>, vector<32x8xbf16>
    %c0_14 = arith.constant 0 : index
    %c0_15 = arith.constant 0 : index
    %18 = vector.load %arg7[%c0_14, %c0_15] : memref<1x8xf32, #tpu.memory_space<vmem>>, vector<1x8xf32>
    %cst_16 = arith.constant dense<0.000000e+00> : vector<8x8xf32>
    %19 = tpu.matmul %16, %17, %cst_16 {dimension_numbers = #tpu.dot_dimension_numbers<[1], [0], [0], [1], [0, 0, 1, 1], [], []>} : vector<8x32xbf16>, vector<32x8xbf16>, vector<8x8xf32> -> vector<8x8xf32>
    %20 = vector.broadcast %18 : vector<1x8xf32> to vector<8x8xf32>
    %21 = arith.addf %19, %20 : vector<8x8xf32>
    %c0_17 = arith.constant 0 : index
    %c0_18 = arith.constant 0 : index
    %22 = vector.load %arg8[%c0_17, %c0_18] : memref<8x8xf32, #tpu.memory_space<vmem>>, vector<8x8xf32>
    tpu.vector_store %arg8[%c0_17, %c0_18], %21 {strides = array<i32>} : memref<8x8xf32, #tpu.memory_space<vmem>>, vector<8x8xf32>,
    return
  }
  func.func @transform_0(%arg0: i32) -> (i32, i32) {
    %c0_i32 = arith.constant 0 : i32
    %c0_i32_0 = arith.constant 0 : i32
    return %arg0, %c0_i32 : i32, i32
  }
  func.func @transform_1(%arg0: i32) -> (i32, i32) {
    %c0_i32 = arith.constant 0 : i32
    %c0_i32_0 = arith.constant 0 : i32
    %c0_i32_1 = arith.constant 0 : i32
    return %c0_i32, %c0_i32_0 : i32, i32
  }
  func.func @transform_2(%arg0: i32) -> (i32, i32) {
    %c0_i32 = arith.constant 0 : i32
    %c0_i32_0 = arith.constant 0 : i32
    %c0_i32_1 = arith.constant 0 : i32
    return %c0_i32, %c0_i32_0 : i32, i32
  }
  func.func @transform_3(%arg0: i32) -> (i32, i32) {
    %c0_i32 = arith.constant 0 : i32
    %c0_i32_0 = arith.constant 0 : i32
    %c0_i32_1 = arith.constant 0 : i32
    return %c0_i32, %c0_i32_0 : i32, i32
  }
  func.func @transform_4(%arg0: i32) -> (i32, i32) {
    %c0_i32 = arith.constant 0 : i32
    %c0_i32_0 = arith.constant 0 : i32
    %c0_i32_1 = arith.constant 0 : i32
    return %c0_i32, %c0_i32_0 : i32, i32
  }
  func.func @transform_5(%arg0: i32) -> (i32, i32) {
    %c0_i32 = arith.constant 0 : i32
    %c0_i32_0 = arith.constant 0 : i32
    %c0_i32_1 = arith.constant 0 : i32
    return %c0_i32, %c0_i32_0 : i32, i32
  }
  func.func @transform_6(%arg0: i32) -> (i32, i32) {
    %c0_i32 = arith.constant 0 : i32
    %c0_i32_0 = arith.constant 0 : i32
    %c0_i32_1 = arith.constant 0 : i32
    return %c0_i32, %c0_i32_0 : i32, i32
  }
  func.func @transform_7(%arg0: i32) -> (i32, i32) {
    %c0_i32 = arith.constant 0 : i32
    %c0_i32_0 = arith.constant 0 : i32
    return %arg0, %c0_i32 : i32, i32
  }
}

</mosaic_0001>

<bundles_post_ra>
// kernel: mlp_q_forward.1
= control target key start
LH: loop header
LB: loop body
LE: loop exit
PB: predicated region body
PF: predicated region fallthrough
CT: control target
= control target key end

     0   :  { %v312_v1 = vmov 0.0   ;;  %vm44_vm0 = vcmask 130048   ;;  %vm313_vm1 = vmmov 0   ;;  %s385_s0 = inlined_call_operand.vmem [shape: bf16[8,16], index: 0, kind: input, shape index: {}]   ;;  %s386_s1 = inlined_call_operand.vmem [shape: bf16[16,32], index: 1, kind: input, shape index: {}]   ;;  %s387_s2 = inlined_call_operand.vmem [shape: f32[1,32], index: 2, kind: input, shape index: {}]   ;;  %s388_s3 = inlined_call_operand.vmem [shape: bf16[32,32], index: 3, kind: input, shape index: {}]   ;;  %s389_s4 = inlined_call_operand.vmem [shape: f32[1,32], index: 4, kind: input, shape index: {}]   ;;  %s390_s5 = inlined_call_operand.vmem [shape: bf16[32,8], index: 5, kind: input, shape index: {}]   ;;  %s391_s6 = inlined_call_operand.vmem [shape: f32[1,8], index: 6, kind: input, shape index: {}]   ;;  %s392_s7 = inlined_call_operand.hbm [shape: f32[8,8], index: 7, kind: output, shape index: {}]  }
   0x1   :  { %v285_v0 = vld [vmem:[%s386_s1] sm:$0xff]   ;;  %260 = vmatprep.subr.bf16.mxu0 %v312_v1  ;;  %266 = vmatprep.subr.bf16.mxu1 %v312_v1 }
   0x2   :  { %v28_v2 = vld [vmem:[%s385_s0] sm:$0xf]  ;;  %261 = vmatpush3.bf16.msra.mxu0 %v285_v0  ;;  %262 = vmatprep.mubr.msk.bf16.mxu0 %vm313_vm1, %v312_v1 }
   0x3   :  { %270 = vmatprep.mubr.msk.bf16.mxu1 %vm313_vm1, %v312_v1  ;;  %274 = vmatprep.subr.bf16.mxu0 %v312_v1 }
   0x4   :  { %12 = vsyncpa [#allocation3], 0  ;;  %v286_v3 = vld [vmem:[%s388_s3 + $0x8] sm:$0xff]   ;;  %v287_v4 = vld [vmem:[%s388_s3] sm:$0xff]   ;;  %vm113_vm2 = vcmask 261120   ;;  %s314_s15 = smov [#allocation2]  }
   0x5   :  { %263 = vmatmul.mubr.msk.bf16.vlgmr.msra.gmra.mxu0 %vm44_vm0, %v28_v2  ;;  %267 = vmatpush3.bf16.msra.mxu1 %v286_v3  ;;  %v288_v5 = vld [vmem:[%s390_s5 + $0x8] sm:$0xff]   ;;  %v241_v6 = vld [vmem:[%s387_s2] ss:$0 sm:$0xff]  ;;  %s233_s16 = sshll.u32 %s314_s15, 4  ;;  %vm225_vm3 = vcmask 64512   ;;  %s234_s16 = int_to_ptr.vmem [resolvable:$true] %s233_s16 }
   0x6   :  { %278 = vmatprep.mubr.msk.bf16.mxu0 %vm313_vm1, %v312_v1  ;;  %268 = vmatprep.subr.bf16.mxu1 %v312_v1  ;;  %v289_v14 = vld [vmem:[%s390_s5] sm:$0xff]   ;;  %p295_p1 = scmp.lt.s32.totalorder %s234_s16, %s234_s16 }
   0x7   :  { %275 = vmatpush3.bf16.msra.mxu0 %v288_v5  ;;  %v244_v15 = vld [vmem:[%s389_s4] ss:$0 sm:$0xff]  ;;  %s290_s4 = scalar_lea.vmem %s234_s16, 128 }
   0x8   :  { %276 = vmatprep.subr.bf16.mxu0 %v312_v1  ;;  %v248_v23 = vld [vmem:[%s391_s6] ss:$0 sm:$0xff]  ;;  %p291_p0 = scmp.ne.s32.totalorder %s234_s16, %s290_s4  ;;  %p296_p2 = scmp.lt.s32.totalorder %s290_s4, %s290_s4 }
   0x9   :  { %269 = vmatpush3.bf16.msra.mxu1 %v287_v4 }
   0xa   :  { %p297_p3 = por %p296_p2, %p295_p1 }
   0xb   :  { %277 = vmatpush3.bf16.msra.mxu0 %v289_v14 }
   0xc   :  { %p298_p4 = pnand %p297_p3, %p291_p0 }
  0xc5   :  { %v82_v7 = vpop.f32.mrf.mxu0 }
  0xc6   :  { %v83_v8 = vadd.f32 %v241_v6, %v82_v7 }
  0xc7   :  { %v264_v9 = vpop.f32.mrf.mxu0 }
  0xc8   :  { %v88_v10 = vmax.f32 %v83_v8, 0.0 }
  0xc9   :  { %v85_v11 = vpop.f32.mrf.mxu0 }
  0xca   :  { %v89_v12 = vpack.c.bf16 %v88_v10, %v88_v10 }
  0xcb   :  { %v265_v13 = vpop.f32.mrf.mxu0 }
  0xcc   :  { %271 = vmatmul.mubr.msk.bf16.vlgmr.msra.gmra.mxu1 %vm113_vm2, %v89_v12 }
 0x18c   :  { %v151_v16 = vpop.f32.mrf.mxu1 }
 0x18d   :  { %v152_v17 = vadd.f32 %v244_v15, %v151_v16 }
 0x18e   :  { %v272_v18 = vpop.f32.mrf.mxu1 }
 0x18f   :  { %v157_v19 = vmax.f32 %v152_v17, 0.0 }
 0x190   :  { %v154_v20 = vpop.f32.mrf.mxu1 }
 0x191   :  { %v158_v21 = vpack.c.bf16 %v157_v19, %v157_v19 }
 0x192   :  { %v273_v22 = vpop.f32.mrf.mxu1 }
 0x193   :  { %279 = vmatmul.mubr.msk.bf16.vlgmr.msra.gmra.mxu0 %vm113_vm2, %v158_v21 }
 0x253   :  { %v219_v24 = vpop.f32.mrf.mxu0 }
 0x254   :  { %v220_v25 = vadd.f32 %v248_v23, %v219_v24 }
 0x255   :  { %v280_v26 = vpop.f32.mrf.mxu0 }
 0x256   :  { %226 = vst.msk [vmem:[#allocation2] sm:$0xff] %vm225_vm3, %v220_v25 }
 0x257   :  { %v222_v27 = vpop.f32.mrf.mxu0 }
 0x258   :  { %301 = shalt.err (!%p298_p4)
}
 0x259   :  { %236 = dma.vmem_to_hbm [thread:$0]  %s234_s16, 128, %s392_s7, [#allocation3]   ;;  %v281_v28 = vpop.f32.mrf.mxu0 }
 0x25a   :  { %310 = dma.done.wait [#allocation3], 128  }
 0x25b   :  { %311 = vsyncadd [#allocation3], 4294967168 }
 0x25c   :  { %240 = vsyncpa [#allocation3], 1 }

</bundles_post_ra>
